<compile_context>
chip_gen: v6e
topology: v6e:2x2x1
jax: 0.10.0
libtpu: 0.0.40
codegen_flags: <defaults>
</compile_context>

<pallas_src>
import jax
import jax.numpy as jnp
from jax import lax
from jax.experimental import pallas as pl
from jax.experimental.pallas import tpu as pltpu


def _round_up(a: int, b: int) -> int:
    return ((a + b - 1) // b) * b


def _dae_classifier_kernel(x_ref, w1_ref, b1_ref, wdiff_ref, bdiff_ref,
                           out_ref, acc_ref):
    # x_ref    : (TM, TK)  bf16  input activations, K-slab
    # w1_ref   : (D,  TK)  bf16  hidden weight, torch (out, in) layout, K-slab
    # b1_ref   : (1,  D)   f32   hidden bias
    # wdiff_ref: (1,  D)   f32   W_out[1] - W_out[0]
    # bdiff_ref: (1,)      f32   b_out[1] - b_out[0]       (SMEM scalar)
    # out_ref  : (TM, 2)   f32   softmax probabilities
    # acc_ref  : (TM, D)   f32   hidden pre-activation accumulator (VMEM scratch)
    k = pl.program_id(1)

    @pl.when(k == 0)
    def _init():
        acc_ref[...] = jnp.zeros_like(acc_ref)

    # Partial hidden pre-activation: x_k @ W1[:, k-slab].T on the MXU with f32
    # accumulation.  Contracting dim 1 of both operands ("trans_b") lets us use
    # the torch-layout weight directly (no wrapper-side transpose).
    acc_ref[...] += lax.dot_general(
        x_ref[...], w1_ref[...],
        dimension_numbers=(((1,), (1,)), ((), ())),
        preferred_element_type=jnp.float32,
    )

    @pl.when(k == pl.num_programs(1) - 1)
    def _epilogue():
        # f32 epilogue (VPU/XLU/EUP): bias + ReLU, then 2-class softmax as a
        # numerically stable sigmoid of the logit difference (mathematically
        # identical to softmax over 2 classes).
        h = jnp.maximum(acc_ref[...] + b1_ref[...], 0.0)
        diff = jnp.sum(h * wdiff_ref[...], axis=-1, keepdims=True) + bdiff_ref[0]
        # column 0: sigmoid(-diff) == softmax[..., 0]; column 1: sigmoid(+diff)
        lane = lax.broadcasted_iota(jnp.int32, out_ref.shape, 1)
        t = jnp.where(lane == 0, -diff, diff)
        z = jnp.exp(-jnp.abs(t))                       # EUP exp, stable for any t
        p = jnp.where(t >= 0.0, 1.0 / (1.0 + z), z / (1.0 + z))
        out_ref[...] = p.astype(out_ref.dtype)


def dae_classifier_forward(x, w_hidden, b_hidden, w_output, b_output,
                           *, tm=128, tk=512):
    """DAEClassifier.forward (eval mode) via Pallas.

    x        : (B, D) f32
    w_hidden : (D, D) torch layout (out_features, in_features)
    b_hidden : (D,)
    w_output : (2, D) torch layout
    b_output : (2,)
    returns  : (B, 2) f32 softmax probabilities
    """
    B, D = x.shape

    # Tile sizes: respect the (8, 128) TPU tiling; shrink for tiny problems.
    tm = _round_up(max(8, min(tm, _round_up(B, 8))), 8)
    tk = _round_up(max(128, min(tk, _round_up(D, 128))), 128)
    Bp = _round_up(B, tm)
    Dp = _round_up(D, tk)

    # Zero padding is semantically neutral: padded contraction columns add 0,
    # padded hidden units have zero weight/bias so relu(0) = 0 and contribute
    # nothing to the logits, and padded batch rows are sliced off below.
    if Bp != B or Dp != D:
        x = jnp.pad(x, ((0, Bp - B), (0, Dp - D)))
    if Dp != D:
        w_hidden = jnp.pad(w_hidden, ((0, Dp - D), (0, Dp - D)))
        b_hidden = jnp.pad(b_hidden, (0, Dp - D))
        w_output = jnp.pad(w_output, ((0, 0), (0, Dp - D)))

    # bf16 MXU operands (f32 accumulate inside the kernel); epilogue params f32.
    x_bf = x.astype(jnp.bfloat16)
    w1_bf = w_hidden.astype(jnp.bfloat16)                    # (Dp, Dp), torch layout
    b1 = b_hidden.astype(jnp.float32).reshape(1, Dp)
    w_diff = (w_output[1] - w_output[0]).astype(jnp.float32).reshape(1, Dp)
    b_diff = (b_output[1] - b_output[0]).astype(jnp.float32).reshape(1)

    grid = (Bp // tm, Dp // tk)

    out = pl.pallas_call(
        _dae_classifier_kernel,
        out_shape=jax.ShapeDtypeStruct((Bp, 2), jnp.float32),
        grid_spec=pltpu.PrefetchScalarGridSpec(
            num_scalar_prefetch=0,
            grid=grid,
            in_specs=[
                pl.BlockSpec((tm, tk), lambda i, k: (i, k)),          # x
                pl.BlockSpec((Dp, tk), lambda i, k: (0, k)),          # W_hidden (out, in)
                pl.BlockSpec((1, Dp), lambda i, k: (0, 0)),           # b_hidden
                pl.BlockSpec((1, Dp), lambda i, k: (0, 0)),           # W_out[1]-W_out[0]
                pl.BlockSpec(memory_space=pltpu.MemorySpace.SMEM),    # b_out diff scalar
            ],
            out_specs=pl.BlockSpec((tm, 2), lambda i, k: (i, 0)),
            scratch_shapes=[pltpu.VMEM((tm, Dp), jnp.float32)],
        ),
        compiler_params=pltpu.CompilerParams(
            # batch axis parallel (both v7x TensorCores), K is a reduction axis
            dimension_semantics=("parallel", "arbitrary"),
        ),
    )(x_bf, w1_bf, b1, w_diff, b_diff)

    return out[:B]


def _reference_matched(x, w_hidden, b_hidden, w_output, b_output):
    """Pure-JAX reference using the same bf16-operand / f32-accumulate matmul."""
    h = jax.nn.relu(
        jnp.dot(x.astype(jnp.bfloat16), w_hidden.astype(jnp.bfloat16).T,
                preferred_element_type=jnp.float32) + b_hidden)
    logits = jnp.dot(h, w_output.T, precision=lax.Precision.HIGHEST) + b_output
    return jax.nn.softmax(logits, axis=1)


def _reference_f32(x, w_hidden, b_hidden, w_output, b_output):
    """Full-f32 reference (the literal PyTorch math, eval mode)."""
    h = jax.nn.relu(
        jnp.dot(x, w_hidden.T, precision=lax.Precision.HIGHEST) + b_hidden)
    logits = jnp.dot(h, w_output.T, precision=lax.Precision.HIGHEST) + b_output
    return jax.nn.softmax(logits, axis=1)


if __name__ == "__main__":
    key = jax.random.PRNGKey(0)

    def make_inputs(k, B, D):
        kx, k1, k2, k3, k4 = jax.random.split(k, 5)
        x = jax.random.normal(kx, (B, D), dtype=jnp.float32)
        bound = 1.0 / (D ** 0.5)   # torch.nn.Linear default init range
        w_hidden = jax.random.uniform(k1, (D, D), jnp.float32, -bound, bound)
        b_hidden = jax.random.uniform(k2, (D,), jnp.float32, -bound, bound)
        w_output = jax.random.uniform(k3, (2, D), jnp.float32, -bound, bound)
        b_output = jax.random.uniform(k4, (2,), jnp.float32, -bound, bound)
        return x, w_hidden, b_hidden, w_output, b_output

    cases = [
        # (B, D, tm, tk)
        (8, 96, 128, 512),    # tiny, unaligned -> exercises padding path, 1x1 grid
        (32, 384, 16, 128),   # multi-step grid: 2 batch tiles x 3 K tiles
    ]
    for case_key, (B, D, tm, tk) in zip(jax.random.split(key, len(cases)), cases):
        x, wh, bh, wo, bo = make_inputs(case_key, B, D)
        y = jax.block_until_ready(
            dae_classifier_forward(x, wh, bh, wo, bo, tm=tm, tk=tk))

        assert y.shape == (B, 2), y.shape
        assert bool(jnp.all(jnp.isfinite(y))), "non-finite output"
        assert jnp.allclose(jnp.sum(y, axis=1), 1.0, atol=1e-5), \
            "softmax rows must sum to 1"

        y_bf = _reference_matched(x, wh, bh, wo, bo)
        y_f32 = _reference_f32(x, wh, bh, wo, bo)
        assert jnp.allclose(y, y_bf, atol=1e-4), \
            f"mismatch vs bf16-matched reference: {float(jnp.max(jnp.abs(y - y_bf)))}"
        assert jnp.allclose(y, y_f32, atol=2e-2), \
            f"mismatch vs f32 reference: {float(jnp.max(jnp.abs(y - y_f32)))}"

    print("KERNEL_OK")
</pallas_src>

<mosaic_0001>
module attributes {stable_mosaic.version = 11 : i64} {
  func.func @_dae_classifier_kernel(%arg0: i32, %arg1: i32, %arg2: memref<8x128xbf16, #tpu.memory_space<vmem>>, %arg3: memref<128x128xbf16, #tpu.memory_space<vmem>>, %arg4: memref<1x128xf32, #tpu.memory_space<vmem>>, %arg5: memref<1x128xf32, #tpu.memory_space<vmem>>, %arg6: memref<1xf32, #tpu.memory_space<smem>>, %arg7: memref<8x2xf32, #tpu.memory_space<vmem>>, %arg8: memref<8x128xf32, #tpu.memory_space<vmem>>) attributes {dimension_semantics = [#tpu.dimension_semantics<parallel>, #tpu.dimension_semantics<arbitrary>], iteration_bounds = array<i64: 1, 1>, scalar_prefetch = 0 : i64, scratch_operands = 1 : i64, tpu.core_type = #tpu.core_type<tc>, window_params = [{transform_indices = @transform_0, window_bounds = array<i64: 8, 128>}, {transform_indices = @transform_1, window_bounds = array<i64: 128, 128>}, {pipeline_mode = #tpu.pipeline_mode<synchronous>, transform_indices = @transform_2, window_bounds = array<i64: 1, 128>}, {pipeline_mode = #tpu.pipeline_mode<synchronous>, transform_indices = @transform_3, window_bounds = array<i64: 1, 128>}, {transform_indices = @transform_4, window_bounds = array<i64: 1>}, {transform_indices = @transform_5, window_bounds = array<i64: 8, 2>}]} {
    %c0_i32 = arith.constant 0 : i32
    %0 = arith.cmpi eq, %arg1, %c0_i32 : i32
    %1 = arith.extui %0 : i1 to i32
    %c0_i32_0 = arith.constant 0 : i32
    %2 = arith.cmpi ne, %1, %c0_i32_0 : i32
    scf.if %2 {
      %cst_10 = arith.constant 0.000000e+00 : f32
      %12 = vector.broadcast %cst_10 : f32 to vector<8x128xf32>
      %c0_11 = arith.constant 0 : index
      %c0_12 = arith.constant 0 : index
      %13 = vector.load %arg8[%c0_11, %c0_12] : memref<8x128xf32, #tpu.memory_space<vmem>>, vector<8x128xf32>
      tpu.vector_store %arg8[%c0_11, %c0_12], %12 {strides = array<i32>} : memref<8x128xf32, #tpu.memory_space<vmem>>, vector<8x128xf32>,
    } else {
    }
    %c0 = arith.constant 0 : index
    %c0_1 = arith.constant 0 : index
    %3 = vector.load %arg8[%c0, %c0_1] : memref<8x128xf32, #tpu.memory_space<vmem>>, vector<8x128xf32>
    %c0_2 = arith.constant 0 : index
    %c0_3 = arith.constant 0 : index
    %4 = vector.load %arg2[%c0_2, %c0_3] : memref<8x128xbf16, #tpu.memory_space<vmem>>, vector<8x128xbf16>
    %c0_4 = arith.constant 0 : index
    %c0_5 = arith.constant 0 : index
    %5 = vector.load %arg3[%c0_4, %c0_5] : memref<128x128xbf16, #tpu.memory_space<vmem>>, vector<128x128xbf16>
    %cst = arith.constant dense<0.000000e+00> : vector<8x128xf32>
    %6 = tpu.matmul %4, %5, %cst {dimension_numbers = #tpu.dot_dimension_numbers<[1], [1], [0], [0], [0, 0, 1, 0], [], []>} : vector<8x128xbf16>, vector<128x128xbf16>, vector<8x128xf32> -> vector<8x128xf32>
    %7 = arith.addf %3, %6 : vector<8x128xf32>
    %c0_6 = arith.constant 0 : index
    %c0_7 = arith.constant 0 : index
    %8 = vector.load %arg8[%c0_6, %c0_7] : memref<8x128xf32, #tpu.memory_space<vmem>>, vector<8x128xf32>
    tpu.vector_store %arg8[%c0_6, %c0_7], %7 {strides = array<i32>} : memref<8x128xf32, #tpu.memory_space<vmem>>, vector<8x128xf32>,
    %c0_i32_8 = arith.constant 0 : i32
    %9 = arith.cmpi eq, %arg1, %c0_i32_8 : i32
    %10 = arith.extui %9 : i1 to i32
    %c0_i32_9 = arith.constant 0 : i32
    %11 = arith.cmpi ne, %10, %c0_i32_9 : i32
    scf.if %11 {
      %c0_10 = arith.constant 0 : index
      %c0_11 = arith.constant 0 : index
      %12 = vector.load %arg8[%c0_10, %c0_11] : memref<8x128xf32, #tpu.memory_space<vmem>>, vector<8x128xf32>
      %c0_12 = arith.constant 0 : index
      %c0_13 = arith.constant 0 : index
      %13 = vector.load %arg4[%c0_12, %c0_13] : memref<1x128xf32, #tpu.memory_space<vmem>>, vector<1x128xf32>
      %14 = vector.broadcast %13 : vector<1x128xf32> to vector<8x128xf32>
      %15 = arith.addf %12, %14 : vector<8x128xf32>
      %cst_14 = arith.constant 0.000000e+00 : f32
      %16 = vector.broadcast %cst_14 : f32 to vector<8x128xf32>
      %17 = arith.maximumf %15, %16 : vector<8x128xf32>
      %c0_15 = arith.constant 0 : index
      %c0_16 = arith.constant 0 : index
      %18 = vector.load %arg5[%c0_15, %c0_16] : memref<1x128xf32, #tpu.memory_space<vmem>>, vector<1x128xf32>
      %19 = vector.broadcast %18 : vector<1x128xf32> to vector<8x128xf32>
      %20 = arith.mulf %17, %19 : vector<8x128xf32>
      %cst_17 = arith.constant dense<0.000000e+00> : vector<8xf32>
      %21 = vector.multi_reduction <add>, %20, %cst_17 [1] : vector<8x128xf32> to vector<8xf32>
      %22 = vector.shape_cast %21 : vector<8xf32> to vector<8x1xf32>
      %c0_18 = arith.constant 0 : index
      %23 = memref.load %arg6[%c0_18] : memref<1xf32, #tpu.memory_space<smem>>
      %24 = vector.broadcast %23 : f32 to vector<8x1xf32>
      %25 = arith.addf %22, %24 : vector<8x1xf32>
      %26 = tpu.iota {dimensions = array<i32: 1>} : vector<8x2xi32>
      %c0_i32_19 = arith.constant 0 : i32
      %27 = vector.broadcast %c0_i32_19 : i32 to vector<8x2xi32>
      %28 = arith.cmpi eq, %26, %27 : vector<8x2xi32>
      %cst_20 = arith.constant 0.000000e+00 : f32
      %29 = vector.broadcast %cst_20 : f32 to vector<8x1xf32>
      %30 = arith.subf %29, %25 : vector<8x1xf32>
      %31 = vector.shape_cast %30 : vector<8x1xf32> to vector<8x1xf32>
      %32 = vector.broadcast %31 : vector<8x1xf32> to vector<8x2xf32>
      %33 = vector.shape_cast %25 : vector<8x1xf32> to vector<8x1xf32>
      %34 = vector.broadcast %33 : vector<8x1xf32> to vector<8x2xf32>
      %35 = arith.select %28, %32, %34 : vector<8x2xi1>, vector<8x2xf32>
      %36 = math.absf %35 : vector<8x2xf32>
      %cst_21 = arith.constant 0.000000e+00 : f32
      %37 = vector.broadcast %cst_21 : f32 to vector<8x2xf32>
      %38 = arith.subf %37, %36 : vector<8x2xf32>
      %39 = math.exp %38 : vector<8x2xf32>
      %cst_22 = arith.constant 0.000000e+00 : f32
      %40 = vector.broadcast %cst_22 : f32 to vector<8x2xf32>
      %41 = arith.cmpf oge, %35, %40 : vector<8x2xf32>
      %cst_23 = arith.constant 1.000000e+00 : f32
      %42 = vector.broadcast %cst_23 : f32 to vector<8x2xf32>
      %43 = arith.addf %42, %39 : vector<8x2xf32>
      %cst_24 = arith.constant 1.000000e+00 : f32
      %44 = vector.broadcast %cst_24 : f32 to vector<8x2xf32>
      %45 = arith.divf %44, %43 : vector<8x2xf32>
      %cst_25 = arith.constant 1.000000e+00 : f32
      %46 = vector.broadcast %cst_25 : f32 to vector<8x2xf32>
      %47 = arith.addf %46, %39 : vector<8x2xf32>
      %48 = arith.divf %39, %47 : vector<8x2xf32>
      %49 = arith.select %41, %45, %48 : vector<8x2xi1>, vector<8x2xf32>
      %c0_26 = arith.constant 0 : index
      %c0_27 = arith.constant 0 : index
      %50 = vector.load %arg7[%c0_26, %c0_27] : memref<8x2xf32, #tpu.memory_space<vmem>>, vector<8x2xf32>
      tpu.vector_store %arg7[%c0_26, %c0_27], %49 {strides = array<i32>} : memref<8x2xf32, #tpu.memory_space<vmem>>, vector<8x2xf32>,
    } else {
    }
    return
  }
  func.func @transform_0(%arg0: i32, %arg1: i32) -> (i32, i32) {
    %c0_i32 = arith.constant 0 : i32
    return %arg0, %arg1 : i32, i32
  }
  func.func @transform_1(%arg0: i32, %arg1: i32) -> (i32, i32) {
    %c0_i32 = arith.constant 0 : i32
    %c0_i32_0 = arith.constant 0 : i32
    return %c0_i32, %arg1 : i32, i32
  }
  func.func @transform_2(%arg0: i32, %arg1: i32) -> (i32, i32) {
    %c0_i32 = arith.constant 0 : i32
    %c0_i32_0 = arith.constant 0 : i32
    %c0_i32_1 = arith.constant 0 : i32
    return %c0_i32, %c0_i32_0 : i32, i32
  }
  func.func @transform_3(%arg0: i32, %arg1: i32) -> (i32, i32) {
    %c0_i32 = arith.constant 0 : i32
    %c0_i32_0 = arith.constant 0 : i32
    %c0_i32_1 = arith.constant 0 : i32
    return %c0_i32, %c0_i32_0 : i32, i32
  }
  func.func @transform_4(%arg0: i32, %arg1: i32) -> i32 {
    %c0_i32 = arith.constant 0 : i32
    %c0_i32_0 = arith.constant 0 : i32
    return %c0_i32 : i32
  }
  func.func @transform_5(%arg0: i32, %arg1: i32) -> (i32, i32) {
    %c0_i32 = arith.constant 0 : i32
    %c0_i32_0 = arith.constant 0 : i32
    return %arg0, %c0_i32 : i32, i32
  }
}

</mosaic_0001>

<bundles_post_ra>
// kernel: tpu_custom_call.1
= control target key start
LH: loop header
LB: loop body
LE: loop exit
PB: predicated region body
PF: predicated region fallthrough
CT: control target
= control target key end

     0   :  { %11 = vsyncpa [#allocation5], 0  ;;  %s365_s0 = inlined_call_operand.hbm [shape: bf16[8,128], index: 0, kind: input, shape index: {}]   ;;  %s366_s1 = inlined_call_operand.hbm [shape: bf16[128,128], index: 1, kind: input, shape index: {}]   ;;  %s367_s2 = inlined_call_operand.vmem [shape: f32[1,128], index: 2, kind: input, shape index: {}]   ;;  %s368_s3 = inlined_call_operand.vmem [shape: f32[1,128], index: 3, kind: input, shape index: {}]   ;;  %s369_s4 = inlined_call_operand.<no memory space> [shape: f32[1], index: 4, kind: input, shape index: {}]   ;;  %s370_s5 = inlined_call_operand.vmem [shape: f32[8,2], index: 5, kind: output, shape index: {}]  }
   0x1   :  { %12 = vsyncpa [#allocation7], 0  ;;  %s311_s18 = smov [#allocation4]   ;;  %s312_s20 = smov [#allocation6]  }
   0x2   :  { %s19_s19 = sshll.u32 %s311_s18, 4  ;;  %s28_s21 = sshll.u32 %s312_s20, 4  ;;  %s20_s19 = int_to_ptr.vmem [resolvable:$true] %s19_s19  ;;  %s29_s21 = int_to_ptr.vmem [resolvable:$true] %s28_s21 }
   0x3   :  { %s275_s22 = scalar_lea.vmem %s20_s19, 64  ;;  %p280_p1 = scmp.lt.s32.totalorder %s20_s19, %s20_s19 }
   0x4   :  { %p276_p0 = scmp.ne.s32.totalorder %s20_s19, %s275_s22  ;;  %p281_p2 = scmp.lt.s32.totalorder %s275_s22, %s275_s22 }
   0x6   :  { %p282_p3 = por %p281_p2, %p280_p1 }
   0x8   :  { %p283_p4 = pnand %p282_p3, %p276_p0 }
   0xa   :  { %286 = shalt.err (!%p283_p4)
}
   0xb   :  { %22 = dma.hbm_to_vmem [thread:$0]  %s365_s0, 64, %s20_s19, [#allocation5]  }
   0xc   :  { %s295_s25 = scalar_lea.vmem %s29_s21, 1024  ;;  %p300_p6 = scmp.lt.s32.totalorder %s29_s21, %s29_s21 }
   0xd   :  { %p296_p5 = scmp.ne.s32.totalorder %s29_s21, %s295_s25  ;;  %p301_p7 = scmp.lt.s32.totalorder %s295_s25, %s295_s25 }
   0xf   :  { %p302_p8 = por %p301_p7, %p300_p6 }
  0x11   :  { %p303_p9 = pnand %p302_p8, %p296_p5 }
  0x13   :  { %306 = shalt.err (!%p303_p9)
}
  0x14   :  { %s313_s26 = smov 64   ;;  %s314_s27 = smov 4  }
  0x15   :  { %34 = dma.hbm_to_vmem [thread:$0]  %s366_s1, 1024, %s29_s21, [#allocation7], %s313_s26, %s313_s26, %s314_s27  }
  0x16   :  { %307 = dma.done.wait [#allocation5], 64  }
  0x17   :  { %308 = vsyncadd [#allocation5], 4294967232 }
  0x18   :  { %309 = dma.done.wait [#allocation7], 1024  }
  0x19   :  { %310 = vsyncadd [#allocation7], 4294966272  ;;  %v315_v0 = vmov 0.0   ;;  %vm316_vm0 = vmmov 0   ;;  %v255_v1 = vld [vmem:[#allocation6 + $0x38] sm:$0xff]   ;;  %v256_v2 = vld [vmem:[#allocation6 + $0x30] sm:$0xff]   ;;  %v187_v19 = vlaneseq  ;;  %v185_v20 = vstv %s369_s4 }
  0x1a   :  { %229 = vmatprep.subr.bf16.mxu0 %v315_v0  ;;  %245 = vmatprep.mubr.msk.bf16.mxu0 %vm316_vm0, %v315_v0  ;;  %v257_v3 = vld [vmem:[#allocation6 + $0x28] sm:$0xff]   ;;  %v258_v4 = vld [vmem:[#allocation6 + $0x20] sm:$0xff]   ;;  %v259_v5 = vld [vmem:[#allocation6 + $0x18] sm:$0xff]   ;;  %vm202_vm2 = vcmask 15360  }
  0x1b   :  { %230 = vmatpush3.bf16.xpose.msra.mxu0 %v255_v1  ;;  %v260_v6 = vld [vmem:[#allocation6 + $0x10] sm:$0xff]   ;;  %v261_v7 = vld [vmem:[#allocation6 + $0x8] sm:$0xff]   ;;  %v262_v8 = vld [vmem:[#allocation6] sm:$0xff]   ;;  %v188_v21 = vand.u32 127, %v187_v19 }
  0x1c   :  { %231 = vmatprep.subr.bf16.mxu0 %v315_v0  ;;  %v54_v9 = vld [vmem:[#allocation4] sm:$0xf] }
  0x1d   :  { %v218_v10 = vld [vmem:[%s367_s2] ss:$0 sm:$0xff]  ;;  %vm189_vm1 = vcmp.eq.s32.totalorder %v188_v21, 0 }
  0x1e   :  { %v219_v14 = vld [vmem:[%s368_s3] ss:$0 sm:$0xff] }
  0x23   :  { %232 = vmatpush3.bf16.xpose.msra.mxu0 %v256_v2 }
  0x24   :  { %233 = vmatprep.subr.bf16.mxu0 %v315_v0 }
  0x2b   :  { %234 = vmatpush3.bf16.xpose.msra.mxu0 %v257_v3 }
  0x2c   :  { %235 = vmatprep.subr.bf16.mxu0 %v315_v0 }
  0x33   :  { %236 = vmatpush3.bf16.xpose.msra.mxu0 %v258_v4 }
  0x34   :  { %237 = vmatprep.subr.bf16.mxu0 %v315_v0 }
  0x3b   :  { %238 = vmatpush3.bf16.xpose.msra.mxu0 %v259_v5 }
  0x3c   :  { %239 = vmatprep.subr.bf16.mxu0 %v315_v0 }
  0x43   :  { %240 = vmatpush3.bf16.xpose.msra.mxu0 %v260_v6 }
  0x44   :  { %241 = vmatprep.subr.bf16.mxu0 %v315_v0 }
  0x4b   :  { %242 = vmatpush3.bf16.xpose.msra.mxu0 %v261_v7 }
  0x4c   :  { %243 = vmatprep.subr.bf16.mxu0 %v315_v0 }
  0x53   :  { %244 = vmatpush3.bf16.xpose.msra.mxu0 %v262_v8 }
  0x5a   :  { %246 = vmatmul.mubr.bf16.vlgmr.msra.gmra.mxu0 %v54_v9 }
 0x11a   :  { %v153_v11 = vpop.f32.mrf.mxu0 }
 0x11b   :  { %v172_v12 = vadd.f32 %v218_v10, %v153_v11 }
 0x11c   :  { %v247_v13 = vpop.f32.mrf.mxu0 }
 0x11d   :  { %v173_v15 = vmax.f32 %v172_v12, 0.0 }
 0x11e   :  { %v156_v16 = vpop.f32.mrf.mxu0 }
 0x11f   :  { %v181_v17 = vmul.f32 %v219_v14, %v173_v15 }
 0x120   :  { %v248_v18 = vpop.f32.mrf.mxu0 }
 0x121   :  { %182 = vadd.xlane.f32.xlu0 %v181_v17 }
 0x1aa   :  { %v183_v22 = vpop.xlane.xlu0 %182 }
 0x1ab   :  { %v186_v23 = vadd.f32 %v185_v20, %v183_v22 }
 0x1ad   :  { %v190_v24 = vsub.f32 0.0, %v186_v23 }
 0x1af   :  { %v191_v25 = vsel %vm189_vm1, %v190_v24, %v186_v23 }
 0x1b0   :  { %v192_v26 = vand.u32 2147483647, %v191_v25  ;;  %vm196_vm3 = vcmp.ge.f32.partialorder %v191_v25, 0.0 }
 0x1b2   :  { %v193_v27 = vsub.f32 0.0, %v192_v26 }
 0x1b4   :  { %v194_v28 = vmul.f32 1.442695, %v193_v27 }
 0x1b6   :  { %263 = vpow2.f32 %v194_v28 }
 0x1c3   :  { %v264_v29 = vpop.eup %263 }
 0x1c4   :  { %v197_v30 = vadd.f32 1.0, %v264_v29 }
 0x1c6   :  { %265 = vrcp.f32 %v197_v30 }
 0x1d3   :  { %v266_v31 = vpop.eup %265 }
 0x1d4   :  { %v200_v32 = vmul.f32 %v266_v31, %v264_v29 }
 0x1d6   :  { %v201_v33 = vsel %vm196_vm3, %v266_v31, %v200_v32 }
 0x1d7   :  { %203 = vst.msk [vmem:[%s370_s5] sm:$0xff] %vm202_vm2, %v201_v33 }
 0x1d8   :  { %208 = vsyncpa [#allocation5], 1 }
 0x1d9   :  { %209 = vsyncpa [#allocation7], 1 }

</bundles_post_ra>
